<compile_context>
chip_gen: v6e
topology: v6e:2x2x1
jax: 0.10.0
libtpu: 0.0.40
codegen_flags: <defaults>
</compile_context>

<pallas_src>
import functools

import jax
import jax.numpy as jnp
from jax.experimental import pallas as pl
from jax.experimental.pallas import tpu as pltpu


def identity(x):
    return x


def _round_up(x, m):
    return ((x + m - 1) // m) * m


# ----------------------------------------------------------------------------
# Generation-aware VMEM budgets (v7x: 64 MiB physical, v5e/v6e: 128 MiB).
# ----------------------------------------------------------------------------
def _vmem_capacity_bytes():
    try:
        return int(pltpu.get_tpu_info().vmem_capacity_bytes)
    except Exception:
        return 64 * 1024 * 1024                  # conservative (v7x per-TC)


_VMEM_CAP = _vmem_capacity_bytes()
_VMEM_LIMIT_BYTES = min((_VMEM_CAP * 3) // 4, 96 * 1024 * 1024)
_VMEM_BLOCK_BUDGET = _VMEM_LIMIT_BYTES // 2


# ----------------------------------------------------------------------------
# Tiling helpers.
# ----------------------------------------------------------------------------
def _pick_lane_tile(rows, hw, budget=None):
    """Largest multiple-of-128 divisor of `hw` (hw is a multiple of 128) whose
    double-buffered footprint of `rows` f32 rows fits the VMEM block budget,
    preferring >= 2 grid steps so DMA overlaps compute."""
    if budget is None:
        budget = _VMEM_BLOCK_BUDGET
    bytes_per_col = rows * 4 * 2                 # f32, double-buffered
    candidates = [t for t in range(128, hw + 1, 128) if hw % t == 0]
    fitting = [t for t in candidates if t * bytes_per_col <= budget]
    if not fitting:
        return 128
    multi = [t for t in fitting if hw // t >= 2]
    return max(multi) if multi else max(fitting)


def _pick_row_tile(bc, max_rows=64):
    """Sublane-aligned block of the (padded, multiple-of-8) bc axis."""
    if bc <= max_rows:
        return bc
    cands = [d for d in range(8, max_rows + 1, 8) if bc % d == 0]
    return max(cands) if cands else bc


def _plan_shrink(bc, hw, budget=None):
    """Choose the shrink-kernel variant: ('flat', planes_per_block) when whole
    flattened planes fit the per-block VMEM budget, else ('tiled', 0)."""
    if budget is None:
        budget = _VMEM_BLOCK_BUDGET
    per_plane = 7 * 2 * 4 * hw                   # 7 f32 streams, double-buffered
    cands = [d for d in range(8, bc + 1, 8) if bc % d == 0]
    fitting = [d for d in cands if d * per_plane <= budget]
    if not fitting:
        return "tiled", 0
    return "flat", max(fitting, key=lambda d: (bc // d >= 2, d))


# ----------------------------------------------------------------------------
# pltpu.roll direction probe (resolves the roll-convention correctness concern).
# ----------------------------------------------------------------------------
@functools.lru_cache(maxsize=1)
def _roll_matches_jnp():
    """True iff pltpu.roll(x, s, axis) == jnp.roll(x, s, axis)."""
    def _probe(x_ref, o_ref):
        o_ref[...] = pltpu.roll(x_ref[...], shift=1, axis=1)
    x = jax.lax.broadcasted_iota(jnp.float32, (8, 128), 1)
    y = pl.pallas_call(
        _probe, out_shape=jax.ShapeDtypeStruct((8, 128), jnp.float32))(x)
    return bool(jax.device_get(y[0, 0]) > 64.0)  # jnp.roll(x, 1)[0, 0] == 127


def _fwd_roll(x, k, n, roll_is_jnp):
    """out[..., i] = x[..., (i + k) % n] (circular forward shift on lane axis)."""
    k = k % n
    if k == 0:
        return x
    shift = (n - k) if roll_is_jnp else k
    return pltpu.roll(x, shift=shift, axis=x.ndim - 1)


def _tv_shrink(vx, vy, kappa, iso):
    if iso:
        inv_mag = jax.lax.rsqrt(vx * vx + vy * vy + 1e-24)   # EUP slot
        scale = jnp.maximum(1.0 - kappa * inv_mag, 0.0)
        return scale * vx, scale * vy
    zx = jnp.sign(vx) * jnp.maximum(jnp.abs(vx) - kappa, 0.0)
    zy = jnp.sign(vy) * jnp.maximum(jnp.abs(vy) - kappa, 0.0)
    return zx, zy


# ----------------------------------------------------------------------------
# Pallas kernel 1: frequency-domain f-update (elementwise complex arithmetic).
#   f_hat = rhs/den + (rho*conj(Fdx)/den)*F(zx-ux) + (rho*conj(Fdy)/den)*F(zy-uy)
#   (1/den and rho are pre-folded into the loop-invariant constants.)
# ----------------------------------------------------------------------------
def _freq_solve_kernel(rhs_re_ref, rhs_im_ref,
                       vx_re_ref, vx_im_ref, vy_re_ref, vy_im_ref,
                       dx_re_ref, dx_im_ref, dy_re_ref, dy_im_ref,
                       f_re_ref, f_im_ref):
    dxr = dx_re_ref[...]
    dxi = dx_im_ref[...]
    dyr = dy_re_ref[...]
    dyi = dy_im_ref[...]
    vxr = vx_re_ref[...]
    vxi = vx_im_ref[...]
    vyr = vy_re_ref[...]
    vyi = vy_im_ref[...]
    f_re_ref[...] = rhs_re_ref[...] + (dxr * vxr - dxi * vxi) + (dyr * vyr - dyi * vyi)
    f_im_ref[...] = rhs_im_ref[...] + (dxr * vxi + dxi * vxr) + (dyr * vyi + dyi * vyr)


def _freq_solve(rhs_re, rhs_im, vx_re, vx_im, vy_re, vy_im,
                dx_re, dx_im, dy_re, dy_im):
    bc, hwp = rhs_re.shape
    tb = _pick_row_tile(bc)
    # 6 tb-row inputs + 2 tb-row outputs + 4 single-row filter planes per step.
    tile_hw = _pick_lane_tile(rows=8 * tb + 4, hw=hwp)
    grid = (bc // tb, hwp // tile_hw)
    dspec = pl.BlockSpec((tb, tile_hw), lambda i, j: (i, j))
    fspec = pl.BlockSpec((1, tile_hw), lambda i, j: (0, j))
    out = jax.ShapeDtypeStruct((bc, hwp), jnp.float32)
    return pl.pallas_call(
        _freq_solve_kernel,
        grid=grid,
        in_specs=[dspec] * 6 + [fspec] * 4,
        out_specs=(dspec, dspec),
        out_shape=(out, out),
        compiler_params=pltpu.CompilerParams(
            dimension_semantics=("parallel", "parallel"),
            vmem_limit_bytes=_VMEM_LIMIT_BYTES),
        cost_estimate=pl.CostEstimate(
            flops=16 * bc * hwp,
            transcendentals=0,
            bytes_accessed=(8 * bc + 4) * hwp * 4),
    )(rhs_re, rhs_im, vx_re, vx_im, vy_re, vy_im, dx_re, dx_im, dy_re, dy_im)


# ----------------------------------------------------------------------------
# Pallas kernel 2a ("flat"): TV shrink (z-update) + scaled-dual (u) update on
# lane-dense flattened planes (tb, H*W) with in-kernel XLU rolls.
# ----------------------------------------------------------------------------
def _shrink_flat_kernel(kappa_ref, mask_ref, f_ref, ux_ref, uy_ref,
                        wx_ref, wy_ref, uxo_ref, uyo_ref,
                        *, iso, width, roll_is_jnp):
    kappa = kappa_ref[0]
    f = f_ref[...]                        # (tb, H*W), row-major planes
    n = f.shape[-1]
    wd = width
    # Circular forward differences on the flattened lane axis (XLU rolls):
    #   dy: f[(i+1)%H, j]  == forward roll by W (exact, incl. the wrap row)
    #   dx: f[i, (j+1)%W]  == forward roll by 1 everywhere except column W-1,
    #       where the correct value is a forward roll by -(W-1); mask blends it.
    f_dy = _fwd_roll(f, wd, n, roll_is_jnp)
    f_dx1 = _fwd_roll(f, 1, n, roll_is_jnp)
    f_dxw = _fwd_roll(f, n - (wd - 1), n, roll_is_jnp)
    m = mask_ref[...]                     # (1, H*W): 1.0 where column == W-1
    f_dx = f_dx1 + m * (f_dxw - f_dx1)
    vx = (f_dx - f) + ux_ref[...]
    vy = (f_dy - f) + uy_ref[...]
    zx, zy = _tv_shrink(vx, vy, kappa, iso)
    ux_new = vx - zx
    uy_new = vy - zy
    wx_ref[...] = zx - ux_new             # feeds the next f-update: F(z - u)
    wy_ref[...] = zy - uy_new
    uxo_ref[...] = ux_new
    uyo_ref[...] = uy_new


def _shrink_dual_flat(kappa, edge_mask, f, ux, uy, iso, tb):
    bc, H, W = f.shape
    hw = H * W
    ff = f.reshape(bc, hw)
    uxf = ux.reshape(bc, hw)
    uyf = uy.reshape(bc, hw)
    vspec = pl.BlockSpec((tb, hw), lambda i: (i, 0))
    mspec = pl.BlockSpec((1, hw), lambda i: (0, 0))
    sspec = pl.BlockSpec(memory_space=pltpu.MemorySpace.SMEM)
    out = jax.ShapeDtypeStruct((bc, hw), jnp.float32)
    kern = functools.partial(_shrink_flat_kernel, iso=iso, width=W,
                             roll_is_jnp=_roll_matches_jnp())
    wx, wy, uxn, uyn = pl.pallas_call(
        kern,
        grid=(bc // tb,),
        in_specs=[sspec, mspec, vspec, vspec, vspec],
        out_specs=(vspec,) * 4,
        out_shape=(out,) * 4,
        # scaled duals updated in place: ux -> ux_new, uy -> uy_new
        input_output_aliases={3: 2, 4: 3},
        compiler_params=pltpu.CompilerParams(
            dimension_semantics=("parallel",),
            vmem_limit_bytes=_VMEM_LIMIT_BYTES),
        cost_estimate=pl.CostEstimate(
            flops=22 * bc * hw,
            transcendentals=(bc * hw if iso else 0),
            bytes_accessed=(7 * bc + 1) * hw * 4),
    )(kappa, edge_mask, ff, uxf, uyf)
    shape = (bc, H, W)
    return (wx.reshape(shape), wy.reshape(shape),
            uxn.reshape(shape), uyn.reshape(shape))


# ----------------------------------------------------------------------------
# Pallas kernel 2b ("tiled"): fallback for planes too large for VMEM.
# Circular diffs in plain JAX; shrink + dual update as a fully lane-tiled
# elementwise kernel (works for any plane size on any generation).
# ----------------------------------------------------------------------------
def _shrink_tiled_kernel(kappa_ref, vx_ref, vy_ref,
                         wx_ref, wy_ref, uxo_ref, uyo_ref, *, iso):
    kappa = kappa_ref[0]
    vx = vx_ref[...]
    vy = vy_ref[...]
    zx, zy = _tv_shrink(vx, vy, kappa, iso)
    ux_new = vx - zx
    uy_new = vy - zy
    wx_ref[...] = zx - ux_new
    wy_ref[...] = zy - uy_new
    uxo_ref[...] = ux_new
    uyo_ref[...] = uy_new


def _shrink_dual_tiled(kappa, f, ux, uy, iso):
    bc, H, W = f.shape
    hw = H * W
    vx = (jnp.roll(f, -1, axis=2) - f + ux).reshape(bc, hw)
    vy = (jnp.roll(f, -1, axis=1) - f + uy).reshape(bc, hw)
    hw_pad = _round_up(hw, 128)
    if hw_pad != hw:
        pad = ((0, 0), (0, hw_pad - hw))
        vx = jnp.pad(vx, pad)
        vy = jnp.pad(vy, pad)
    tb = _pick_row_tile(bc)
    tile_hw = _pick_lane_tile(rows=6 * tb, hw=hw_pad)
    grid = (bc // tb, hw_pad // tile_hw)
    vspec = pl.BlockSpec((tb, tile_hw), lambda i, j: (i, j))
    sspec = pl.BlockSpec(memory_space=pltpu.MemorySpace.SMEM)
    out = jax.ShapeDtypeStruct((bc, hw_pad), jnp.float32)
    kern = functools.partial(_shrink_tiled_kernel, iso=iso)
    wx, wy, uxn, uyn = pl.pallas_call(
        kern,
        grid=grid,
        in_specs=[sspec, vspec, vspec],
        out_specs=(vspec,) * 4,
        out_shape=(out,) * 4,
        compiler_params=pltpu.CompilerParams(
            dimension_semantics=("parallel", "parallel"),
            vmem_limit_bytes=_VMEM_LIMIT_BYTES),
        cost_estimate=pl.CostEstimate(
            flops=14 * bc * hw_pad,
            transcendentals=(bc * hw_pad if iso else 0),
            bytes_accessed=6 * bc * hw_pad * 4),
    )(kappa, vx, vy)

    def unflat(a):
        return a[:, :hw].reshape(bc, H, W)

    return unflat(wx), unflat(wy), unflat(uxn), unflat(uyn)


# ----------------------------------------------------------------------------
# FFT-based ADMM TV deconvolution (glue in JAX, hot path in the kernels above).
# ----------------------------------------------------------------------------
def _psf2otf_r(psf, shape):
    kh, kw = psf.shape
    H, W = shape
    padded = jnp.zeros((H, W), psf.dtype).at[:kh, :kw].set(psf)
    padded = jnp.roll(padded, (-(kh // 2), -(kw // 2)), axis=(0, 1))
    return jnp.fft.rfft2(padded)


def fft_admm_tv(x, lmbda, rho, w, iso, max_iters):
    # x: (B, C, H, W) float32 ; w: (1, 1, kh, kw) ; lmbda, rho: shape (1,)
    B, C, H, W = x.shape
    bc = B * C
    bc_pad = _round_up(max(bc, 8), 8)            # sublane-aligned batch*channel
    Wr = W // 2 + 1                              # rfft half-spectrum width
    hwf = H * Wr
    hwf_pad = _round_up(hwf, 128)                # lane-dense flattened freq axis
    hw = H * W

    xf = x.reshape(bc, H, W).astype(jnp.float32)
    if bc_pad != bc:
        xf = jnp.pad(xf, ((0, bc_pad - bc), (0, 0), (0, 0)))

    rho_s = rho[0]
    lmbda_s = lmbda[0]

    # Half-spectrum OTFs of the blur kernel and the circular forward-difference ops.
    Fw = _psf2otf_r(w[0, 0].astype(jnp.float32), (H, W))
    dxk = jnp.zeros((H, W), jnp.float32).at[0, 0].set(-1.0).at[0, W - 1].set(1.0)
    dyk = jnp.zeros((H, W), jnp.float32).at[0, 0].set(-1.0).at[H - 1, 0].set(1.0)
    Fdx = jnp.fft.rfft2(dxk)
    Fdy = jnp.fft.rfft2(dyk)

    Fx = jnp.fft.rfft2(xf)
    # NOTE: no epsilon in denom, matching the reference closed-form solve; the
    # DC bin is 1/|sum(w)|^2, which is fragile if the learned kernel sums to ~0.
    denom = jnp.abs(Fw) ** 2 + rho_s * (jnp.abs(Fdx) ** 2 + jnp.abs(Fdy) ** 2)
    inv_den = 1.0 / denom
    # Loop-invariant constants with 1/denom (and rho) pre-folded in.
    rhs = jnp.conj(Fw)[None] * Fx * inv_den[None]
    dxc = (rho_s * jnp.conj(Fdx)) * inv_den
    dyc = (rho_s * jnp.conj(Fdy)) * inv_den

    def flat_pad(z):
        """complex (rows, H, Wr) -> lane-padded f32 (rows, hwf_pad) re/im planes."""
        rows = z.shape[0]
        zr = jnp.real(z).reshape(rows, hwf).astype(jnp.float32)
        zi = jnp.imag(z).reshape(rows, hwf).astype(jnp.float32)
        if hwf_pad != hwf:
            pad = ((0, 0), (0, hwf_pad - hwf))
            zr = jnp.pad(zr, pad)
            zi = jnp.pad(zi, pad)
        return zr, zi

    rhs_re, rhs_im = flat_pad(rhs)
    dx_re, dx_im = flat_pad(dxc[None])
    dy_re, dy_im = flat_pad(dyc[None])

    kappa = jnp.reshape(lmbda_s / rho_s, (1,)).astype(jnp.float32)
    mode, tb_shrink = _plan_shrink(bc_pad, hw)
    if mode == "flat":
        col = jnp.arange(hw, dtype=jnp.int32) % W
        edge_mask = (col == W - 1).astype(jnp.float32).reshape(1, hw)

    f = xf
    wx = jnp.zeros_like(xf)              # wx = zx - ux, wy = zy - uy
    wy = jnp.zeros_like(xf)
    ux = jnp.zeros_like(xf)
    uy = jnp.zeros_like(xf)
    for _ in range(max_iters):
        # -- f-update: closed form in the rfft half-spectrum -------------------
        vx_re, vx_im = flat_pad(jnp.fft.rfft2(wx))
        vy_re, vy_im = flat_pad(jnp.fft.rfft2(wy))
        f_re, f_im = _freq_solve(rhs_re, rhs_im, vx_re, vx_im, vy_re, vy_im,
                                 dx_re, dx_im, dy_re, dy_im)
        f_hat = (f_re[:, :hwf] + 1j * f_im[:, :hwf]).reshape(bc_pad, H, Wr)
        f = jnp.fft.irfft2(f_hat, s=(H, W)).astype(jnp.float32)
        # -- z-update (TV shrink) + scaled-dual update --------------------------
        if mode == "flat":
            wx, wy, ux, uy = _shrink_dual_flat(kappa, edge_mask, f, ux, uy,
                                               iso, tb_shrink)
        else:
            wx, wy, ux, uy = _shrink_dual_tiled(kappa, f, ux, uy, iso)

    return f[:bc].reshape(B, C, H, W)


# ----------------------------------------------------------------------------
# Module-equivalent wrapper with deterministic parameter init.
# ----------------------------------------------------------------------------
class ADMMDeconvPallas:
    def __init__(self, kern_size, max_iters, lmbda=None, rho=None,
                 iso=True, bias=False, activation=identity,
                 key=jax.random.PRNGKey(0)):
        kw_key, kl_key, kr_key, kb_key = jax.random.split(key, 4)
        # kernel: shape (1, 1, kh, kw), xavier_uniform_
        if kern_size:
            kh, kwid = kern_size
            fan = kh * kwid  # fan_in == fan_out == 1 * kh * kw
            bound = (6.0 / (fan + fan)) ** 0.5
            self.w = jax.random.uniform(kw_key, (1, 1, kh, kwid),
                                        jnp.float32, -bound, bound)
        else:
            self.w = jnp.array([], jnp.float32)
        self.max_iters = max_iters
        # lmbda / rho: learnable uniform(0,1) when not given
        # (truthiness on purpose: mirrors the PyTorch module's `if not lmbda`).
        self.lmbda = (jnp.array([lmbda], jnp.float32) if lmbda else
                      jax.random.uniform(kl_key, (1,), jnp.float32, 0.0, 1.0))
        self.rho = (jnp.array([rho], jnp.float32) if rho else
                    jax.random.uniform(kr_key, (1,), jnp.float32, 0.0, 1.0))
        self.iso = iso
        self.b = (jax.random.uniform(kb_key, (1,), jnp.float32, 0.0, 1.0)
                  if bias else jnp.zeros((1,), jnp.float32))
        self.activation = activation
        _roll_matches_jnp()   # warm the roll-convention probe outside any trace

    def __call__(self, x):
        out = fft_admm_tv(x, self.lmbda, self.rho, self.w,
                          self.iso, self.max_iters) + self.b
        return self.activation(out)


if __name__ == "__main__":
    key = jax.random.PRNGKey(0)
    k_x, k_p = jax.random.split(key)
    B, C, H, W = 2, 4, 16, 16
    x = jax.random.normal(k_x, (B, C, H, W), jnp.float32)

    model = ADMMDeconvPallas(kern_size=(3, 3), max_iters=4,
                             lmbda=None, rho=None, iso=True, bias=False,
                             activation=identity, key=k_p)
    fwd = jax.jit(model.__call__)
    out = jax.block_until_ready(fwd(x))
    assert out.shape == (B, C, H, W) and out.dtype == jnp.float32
    print("KERNEL_OK")
</pallas_src>

<mosaic_0001>
module attributes {stable_mosaic.version = 11 : i64} {
  func.func @_probe(%arg0: memref<8x128xf32, #tpu.memory_space<vmem>>, %arg1: memref<8x128xf32, #tpu.memory_space<vmem>>) attributes {dimension_semantics = [], scalar_prefetch = 0 : i64, scratch_operands = 0 : i64, tpu.core_type = #tpu.core_type<tc>} {
    %c0 = arith.constant 0 : index
    %c0_0 = arith.constant 0 : index
    %0 = vector.load %arg0[%c0, %c0_0] : memref<8x128xf32, #tpu.memory_space<vmem>>, vector<8x128xf32>
    %c1_i32 = arith.constant 1 : i32
    %1 = tpu.dynamic_rotate %0 by %c1_i32 dim 1 : vector<8x128xf32>, i32 -> vector<8x128xf32>
    %c0_1 = arith.constant 0 : index
    %c0_2 = arith.constant 0 : index
    %2 = vector.load %arg1[%c0_1, %c0_2] : memref<8x128xf32, #tpu.memory_space<vmem>>, vector<8x128xf32>
    tpu.vector_store %arg1[%c0_1, %c0_2], %1 {strides = array<i32>} : memref<8x128xf32, #tpu.memory_space<vmem>>, vector<8x128xf32>,
    return
  }
}

</mosaic_0001>

<bundles_post_ra>
// kernel: tpu_custom_call.1
= control target key start
LH: loop header
LB: loop body
LE: loop exit
PB: predicated region body
PF: predicated region fallthrough
CT: control target
= control target key end

     0   :  { %6 = vsyncpa [#allocation3], 0  ;;  %s106_s0 = inlined_call_operand.hbm [shape: f32[8,128], index: 0, kind: input, shape index: {}]   ;;  %s107_s1 = inlined_call_operand.hbm [shape: f32[8,128], index: 1, kind: output, shape index: {}]  }
   0x1   :  { %7 = vsyncpa [#allocation4], 0  ;;  %s87_s6 = smov [#allocation2]  }
   0x2   :  { %s14_s7 = sshll.u32 %s87_s6, 4  ;;  %s15_s7 = int_to_ptr.vmem [resolvable:$true] %s14_s7 }
   0x3   :  { %s51_s8 = scalar_lea.vmem %s15_s7, 128  ;;  %p56_p1 = scmp.lt.s32.totalorder %s15_s7, %s15_s7 }
   0x4   :  { %p52_p0 = scmp.ne.s32.totalorder %s15_s7, %s51_s8  ;;  %p57_p2 = scmp.lt.s32.totalorder %s51_s8, %s51_s8 }
   0x6   :  { %p58_p3 = por %p57_p2, %p56_p1 }
   0x8   :  { %p59_p4 = pnand %p58_p3, %p52_p0 }
   0xa   :  { %62 = shalt.err (!%p59_p4)
}
   0xb   :  { %17 = dma.hbm_to_vmem [thread:$0]  %s106_s0, 128, %s15_s7, [#allocation3]  }
   0xc   :  { %83 = dma.done.wait [#allocation3], 128  }
   0xd   :  { %84 = vsyncadd [#allocation3], 4294967168  ;;  %v21_v0 = vld [vmem:[#allocation2] sm:$0xff]  ;;  %s88_s11 = smov 1   ;;  %s89_s12 = smov [#allocation5]  }
   0xe   :  { %22 = vrot.lane.b32.xlu0 %v21_v0, %s88_s11  ;;  %s31_s13 = sshll.u32 %s89_s12, 4  ;;  %s32_s13 = int_to_ptr.vmem [resolvable:$true] %s31_s13 }
   0xf   :  { %s63_s14 = scalar_lea.vmem %s32_s13, 128  ;;  %p68_p6 = scmp.lt.s32.totalorder %s32_s13, %s32_s13 }
  0x10   :  { %p64_p5 = scmp.ne.s32.totalorder %s32_s13, %s63_s14  ;;  %p69_p7 = scmp.lt.s32.totalorder %s63_s14, %s63_s14 }
  0x12   :  { %p70_p8 = por %p69_p7, %p68_p6 }
  0x14   :  { %p71_p9 = pnand %p70_p8, %p64_p5 }
  0x80   :  { %v23_v1 = vpop.permute.xlu0 %22 }
  0x81   :  { %24 = vst [vmem:[#allocation5] sm:$0xff] %v23_v1 }
  0x82   :  { %74 = shalt.err (!%p71_p9)
}
  0x83   :  { %34 = dma.vmem_to_hbm [thread:$0]  %s32_s13, 128, %s107_s1, [#allocation4]  }
  0x84   :  { %85 = dma.done.wait [#allocation4], 128  }
  0x85   :  { %86 = vsyncadd [#allocation4], 4294967168 }
  0x86   :  { %38 = vsyncpa [#allocation3], 1 }
  0x87   :  { %39 = vsyncpa [#allocation4], 1 }

</bundles_post_ra>
